<compile_context>
chip_gen: v6e
topology: v6e:2x2x1
jax: 0.10.0
libtpu: 0.0.40
codegen_flags: <defaults>
</compile_context>

<pallas_src>
import functools

import jax
import jax.numpy as jnp
from jax import lax
from jax.experimental import pallas as pl
from jax.experimental.pallas import tpu as pltpu


# ----------------------------------------------------------------------------
# Preferred kernel (review-recommended): fused pad via concat, stride folded
# into strided slices, single dense output store.
# ----------------------------------------------------------------------------
def _sum_pool_kernel_sliced(x_ref, o_ref, *, k, stride, padding):
    """One grid step over nc_t planes.

    x_ref: (nc_t, H,  W)   input planes (VMEM block)
    o_ref: (nc_t, Ho, Wo)  pooled output block
    """
    nc_t, h, w = x_ref.shape
    ho, wo = o_ref.shape[1], o_ref.shape[2]
    s, p = stride, padding

    x = x_ref[...]
    if p > 0:
        # Fused zero padding, value-level (no scratch store/reload): concat zero
        # strips along the sublane axis, then the lane axis.
        zr = jnp.zeros((nc_t, p, w), x.dtype)
        x = jnp.concatenate([zr, x, zr], axis=1)
        zc = jnp.zeros((nc_t, h + 2 * p, p), x.dtype)
        x = jnp.concatenate([zc, x, zc], axis=2)
    hp, wp = h + 2 * p, w + 2 * p

    # Rows (sublane dim): k strided slices summed in f32.  Stride folded in —
    # only the ho needed row positions are computed.
    rl = (ho - 1) * s + 1
    racc = lax.slice(x, (0, 0, 0), (nc_t, rl, wp), (1, s, 1)).astype(jnp.float32)
    for ki in range(1, k):
        racc = racc + lax.slice(
            x, (0, ki, 0), (nc_t, ki + rl, wp), (1, s, 1)).astype(jnp.float32)

    # Cols (lane dim): same, only the wo needed column positions.
    cl = (wo - 1) * s + 1
    cacc = lax.slice(racc, (0, 0, 0), (nc_t, ho, cl), (1, 1, s))
    for kj in range(1, k):
        cacc = cacc + lax.slice(racc, (0, 0, kj), (nc_t, ho, kj + cl), (1, 1, s))

    # Single dense full-block store (no masked per-column vst.msk traffic).
    o_ref[...] = cacc.astype(o_ref.dtype)


# ----------------------------------------------------------------------------
# Fallback kernel: uses only universally supported ops (iota / where /
# broadcast / batched dot_general).  Padding + window sum + stride are folded
# into tiny 0/1 selection matrices: out_plane = R @ x_plane @ S.
# Only used if the preferred kernel fails to lower on the current toolchain.
# ----------------------------------------------------------------------------
def _sum_pool_kernel_selmm(x_ref, o_ref, *, k, stride, padding):
    nc_t, h, w = x_ref.shape
    ho, wo = o_ref.shape[1], o_ref.shape[2]
    s, p = stride, padding

    x = x_ref[...].astype(jnp.float32)

    # R[i, r] = 1 iff padded row (r + p) falls in window i: [i*s, i*s + k)
    i_idx = lax.broadcasted_iota(jnp.int32, (ho, h), 0)
    r_idx = lax.broadcasted_iota(jnp.int32, (ho, h), 1) + p
    R = jnp.where((r_idx >= i_idx * s) & (r_idx < i_idx * s + k),
                  jnp.float32(1), jnp.float32(0))

    # S[c, j] = 1 iff padded col (c + p) falls in window j: [j*s, j*s + k)
    c_idx = lax.broadcasted_iota(jnp.int32, (w, wo), 0) + p
    j_idx = lax.broadcasted_iota(jnp.int32, (w, wo), 1)
    S = jnp.where((c_idx >= j_idx * s) & (c_idx < j_idx * s + k),
                  jnp.float32(1), jnp.float32(0))

    R3 = jnp.broadcast_to(R, (nc_t, ho, h))
    S3 = jnp.broadcast_to(S, (nc_t, w, wo))
    racc = jnp.einsum('bih,bhw->biw', R3, x, preferred_element_type=jnp.float32)
    out = jnp.einsum('biw,bwj->bij', racc, S3, preferred_element_type=jnp.float32)
    o_ref[...] = out.astype(o_ref.dtype)


# ----------------------------------------------------------------------------
# Wrapper
# ----------------------------------------------------------------------------
def _device_kind() -> str:
    try:
        return jax.devices()[0].device_kind.lower()
    except Exception:
        return ""


def _is_two_tensorcore_part(kind: str) -> bool:
    # v7x-class parts run 2 TensorCores per chip; v5e/v6e have a single TC.
    k = kind.replace(" ", "")
    return ("v7" in k) or ("tpu7" in k)


def _choose_nc_tile(nc, h, w, hp, wp, ho, wo, itemsize, two_tc):
    """Planes per grid step under a generation-aware per-step VMEM budget:
    ~16 MiB on v7x (64 MiB physical VMEM), ~24 MiB on v5e/v6e (128 MiB).
    Accounts for double-buffered in/out blocks plus the padded plane and f32
    accumulators held live during the step."""
    budget = (16 if two_tc else 24) * 1024 * 1024
    per_plane = ((2 * h * w + 2 * ho * wo + hp * wp) * itemsize
                 + (ho * wp + ho * wo) * 4)
    tile = max(1, min(nc, budget // max(per_plane, 1)))
    if two_tc and nc >= 2:
        # Keep >= 2 grid steps so the "parallel" axis shards across both
        # TensorCores; on single-TC parts this split would only add per-step
        # overhead, so it is gated on the part.
        tile = min(tile, pl.cdiv(nc, 2))
    return tile


_SLICED_OK = True   # flips to False if the strided-slice path fails to lower


def sum_pool2d(x: jax.Array, kernel_size: int, stride: int = 1,
               padding: int = 0) -> jax.Array:
    """Pallas TPU SumPool2d.forward for NCHW input."""
    global _SLICED_OK
    assert jnp.issubdtype(x.dtype, jnp.floating), "float inputs only"
    n, c, h, w = x.shape
    k, s, p = kernel_size, stride, padding
    hp, wp = h + 2 * p, w + 2 * p
    ho = (hp - k) // s + 1     # PyTorch floor formula (ceil_mode=False)
    wo = (wp - k) // s + 1
    assert ho > 0 and wo > 0, "kernel larger than padded input"

    nc = n * c
    xr = x.reshape(nc, h, w)   # free view: collapse N, C into one blocked axis
    two_tc = _is_two_tensorcore_part(_device_kind())
    nc_tile = _choose_nc_tile(nc, h, w, hp, wp, ho, wo, x.dtype.itemsize, two_tc)
    grid = (pl.cdiv(nc, nc_tile),)   # ragged last block is masked by Pallas

    cost = pl.CostEstimate(
        flops=2 * k * k * nc * ho * wo,
        transcendentals=0,
        bytes_accessed=(nc * h * w + nc * ho * wo) * x.dtype.itemsize)

    def build(kernel_fn):
        return pl.pallas_call(
            functools.partial(kernel_fn, k=k, stride=s, padding=p),
            out_shape=jax.ShapeDtypeStruct((nc, ho, wo), x.dtype),
            grid=grid,
            in_specs=[pl.BlockSpec((nc_tile, h, w), lambda i: (i, 0, 0))],
            out_specs=pl.BlockSpec((nc_tile, ho, wo), lambda i: (i, 0, 0)),
            compiler_params=pltpu.CompilerParams(
                dimension_semantics=("parallel",),
                vmem_limit_bytes=48 * 1024 * 1024),
            cost_estimate=cost,
        )

    # TODO(synk): add a channels-last (N*C on the lane dim) path for callers that
    # can supply NHWC input — with W << 128 it makes every store lane-dense, but
    # from this module's NCHW contract it would need an extra HBM transpose pass.

    if _SLICED_OK:
        try:
            out = jax.block_until_ready(build(_sum_pool_kernel_sliced)(xr))
        except Exception:
            # Strided-slice / concat lowering unavailable: use the safe
            # selection-matrix fallback (correct, slightly less optimal).
            _SLICED_OK = False
            out = build(_sum_pool_kernel_selmm)(xr)
    else:
        out = build(_sum_pool_kernel_selmm)(xr)

    return out.reshape(n, c, ho, wo)


if __name__ == "__main__":
    key = jax.random.PRNGKey(0)
    # Small shapes consistent with the module: NCHW = (2, 4, 16, 16).
    x = jax.random.normal(key, (2, 4, 16, 16), dtype=jnp.float32)

    def ref_sum_pool(x, k, s, p):
        # Reference == F.avg_pool2d(...) * k*k with count_include_pad=True.
        xp = jnp.pad(x, ((0, 0), (0, 0), (p, p), (p, p)))
        return lax.reduce_window(
            xp, 0.0, lax.add,
            window_dimensions=(1, 1, k, k),
            window_strides=(1, 1, s, s),
            padding="VALID")

    # Main config: kernel 2, stride 2, padding 1 (exercises fused pad + folded stride).
    out = jax.block_until_ready(sum_pool2d(x, 2, 2, 1))
    ref = ref_sum_pool(x, 2, 2, 1)
    assert out.shape == ref.shape, (out.shape, ref.shape)
    assert jnp.allclose(out, ref, atol=1e-5, rtol=1e-5)

    # Secondary config: module defaults path (kernel 3, stride 1, no padding).
    out2 = jax.block_until_ready(sum_pool2d(x, 3, 1, 0))
    ref2 = ref_sum_pool(x, 3, 1, 0)
    assert out2.shape == ref2.shape, (out2.shape, ref2.shape)
    assert jnp.allclose(out2, ref2, atol=1e-5, rtol=1e-5)

    print("KERNEL_OK")
</pallas_src>

<mosaic_0001>
module attributes {stable_mosaic.version = 11 : i64} {
  func.func @_sum_pool_kernel_selmm(%arg0: i32, %arg1: memref<8x16x16xf32, #tpu.memory_space<vmem>>, %arg2: memref<8x9x9xf32, #tpu.memory_space<vmem>>) attributes {dimension_semantics = [#tpu.dimension_semantics<parallel>], iteration_bounds = array<i64: 1>, scalar_prefetch = 0 : i64, scratch_operands = 0 : i64, tpu.core_type = #tpu.core_type<tc>, window_params = [{transform_indices = @transform_0, window_bounds = array<i64: 8, 16, 16>}, {transform_indices = @transform_1, window_bounds = array<i64: 8, 9, 9>}]} {
    %c0 = arith.constant 0 : index
    %c0_0 = arith.constant 0 : index
    %c0_1 = arith.constant 0 : index
    %0 = vector.load %arg1[%c0, %c0_0, %c0_1] : memref<8x16x16xf32, #tpu.memory_space<vmem>>, vector<8x16x16xf32>
    %1 = tpu.iota {dimensions = array<i32: 0>} : vector<9x16xi32>
    %2 = tpu.iota {dimensions = array<i32: 1>} : vector<9x16xi32>
    %c1_i32 = arith.constant 1 : i32
    %3 = vector.broadcast %c1_i32 : i32 to vector<9x16xi32>
    %4 = arith.addi %2, %3 : vector<9x16xi32>
    %c2_i32 = arith.constant 2 : i32
    %5 = vector.broadcast %c2_i32 : i32 to vector<9x16xi32>
    %6 = arith.muli %1, %5 : vector<9x16xi32>
    %7 = arith.cmpi sge, %4, %6 : vector<9x16xi32>
    %c2_i32_2 = arith.constant 2 : i32
    %8 = vector.broadcast %c2_i32_2 : i32 to vector<9x16xi32>
    %9 = arith.muli %1, %8 : vector<9x16xi32>
    %c2_i32_3 = arith.constant 2 : i32
    %10 = vector.broadcast %c2_i32_3 : i32 to vector<9x16xi32>
    %11 = arith.addi %9, %10 : vector<9x16xi32>
    %12 = arith.cmpi slt, %4, %11 : vector<9x16xi32>
    %13 = arith.andi %7, %12 : vector<9x16xi1>
    %cst = arith.constant 1.000000e+00 : f32
    %cst_4 = arith.constant 0.000000e+00 : f32
    %14 = vector.broadcast %cst : f32 to vector<9x16xf32>
    %15 = vector.broadcast %cst_4 : f32 to vector<9x16xf32>
    %16 = arith.select %13, %14, %15 : vector<9x16xi1>, vector<9x16xf32>
    %17 = tpu.iota {dimensions = array<i32: 0>} : vector<16x9xi32>
    %c1_i32_5 = arith.constant 1 : i32
    %18 = vector.broadcast %c1_i32_5 : i32 to vector<16x9xi32>
    %19 = arith.addi %17, %18 : vector<16x9xi32>
    %20 = tpu.iota {dimensions = array<i32: 1>} : vector<16x9xi32>
    %c2_i32_6 = arith.constant 2 : i32
    %21 = vector.broadcast %c2_i32_6 : i32 to vector<16x9xi32>
    %22 = arith.muli %20, %21 : vector<16x9xi32>
    %23 = arith.cmpi sge, %19, %22 : vector<16x9xi32>
    %c2_i32_7 = arith.constant 2 : i32
    %24 = vector.broadcast %c2_i32_7 : i32 to vector<16x9xi32>
    %25 = arith.muli %20, %24 : vector<16x9xi32>
    %c2_i32_8 = arith.constant 2 : i32
    %26 = vector.broadcast %c2_i32_8 : i32 to vector<16x9xi32>
    %27 = arith.addi %25, %26 : vector<16x9xi32>
    %28 = arith.cmpi slt, %19, %27 : vector<16x9xi32>
    %29 = arith.andi %23, %28 : vector<16x9xi1>
    %cst_9 = arith.constant 1.000000e+00 : f32
    %cst_10 = arith.constant 0.000000e+00 : f32
    %30 = vector.broadcast %cst_9 : f32 to vector<16x9xf32>
    %31 = vector.broadcast %cst_10 : f32 to vector<16x9xf32>
    %32 = arith.select %29, %30, %31 : vector<16x9xi1>, vector<16x9xf32>
    %33 = vector.shape_cast %16 : vector<9x16xf32> to vector<1x9x16xf32>
    %34 = vector.broadcast %33 : vector<1x9x16xf32> to vector<8x9x16xf32>
    %35 = vector.shape_cast %32 : vector<16x9xf32> to vector<1x16x9xf32>
    %36 = vector.broadcast %35 : vector<1x16x9xf32> to vector<8x16x9xf32>
    "tpu.trace_start"() <{level = 10 : i32, message = "bih,bhw->biw"}> : () -> ()
    %cst_11 = arith.constant dense<0.000000e+00> : vector<8x9x16xf32>
    %37 = tpu.matmul %34, %0, %cst_11 {dimension_numbers = #tpu.dot_dimension_numbers<[2], [1], [1], [2], [0, 0, 0, 1, 1, 2], [0], [0]>} : vector<8x9x16xf32>, vector<8x16x16xf32>, vector<8x9x16xf32> -> vector<8x9x16xf32>
    "tpu.trace_stop"() : () -> ()
    "tpu.trace_start"() <{level = 10 : i32, message = "biw,bwj->bij"}> : () -> ()
    %cst_12 = arith.constant dense<0.000000e+00> : vector<8x9x9xf32>
    %38 = tpu.matmul %37, %36, %cst_12 {dimension_numbers = #tpu.dot_dimension_numbers<[2], [1], [1], [2], [0, 0, 0, 1, 1, 2], [0], [0]>} : vector<8x9x16xf32>, vector<8x16x9xf32>, vector<8x9x9xf32> -> vector<8x9x9xf32>
    "tpu.trace_stop"() : () -> ()
    %c0_13 = arith.constant 0 : index
    %c0_14 = arith.constant 0 : index
    %c0_15 = arith.constant 0 : index
    %39 = vector.load %arg2[%c0_13, %c0_14, %c0_15] : memref<8x9x9xf32, #tpu.memory_space<vmem>>, vector<8x9x9xf32>
    tpu.vector_store %arg2[%c0_13, %c0_14, %c0_15], %38 {strides = array<i32>} : memref<8x9x9xf32, #tpu.memory_space<vmem>>, vector<8x9x9xf32>,
    return
  }
  func.func @transform_0(%arg0: i32) -> (i32, i32, i32) {
    %c0_i32 = arith.constant 0 : i32
    %c0_i32_0 = arith.constant 0 : i32
    %c0_i32_1 = arith.constant 0 : i32
    return %arg0, %c0_i32, %c0_i32_0 : i32, i32, i32
  }
  func.func @transform_1(%arg0: i32) -> (i32, i32, i32) {
    %c0_i32 = arith.constant 0 : i32
    %c0_i32_0 = arith.constant 0 : i32
    %c0_i32_1 = arith.constant 0 : i32
    return %arg0, %c0_i32, %c0_i32_0 : i32, i32, i32
  }
}

</mosaic_0001>

<bundles_post_ra>
// kernel: tpu_custom_call.1
= control target key start
LH: loop header
LB: loop body
LE: loop exit
PB: predicated region body
PF: predicated region fallthrough
CT: control target
= control target key end

     0   :  { %6 = vsyncpa [#allocation3], 0  ;;  %s1597_s6 = smov [#allocation2]   ;;  %s1798_s0 = inlined_call_operand.hbm [shape: f32[8,16,16], index: 0, kind: input, shape index: {}]   ;;  %s1799_s1 = inlined_call_operand.vmem [shape: f32[8,9,9], index: 1, kind: output, shape index: {}]  }
   0x1   :  { %s12_s7 = sshll.u32 %s1597_s6, 4  ;;  %s13_s7 = int_to_ptr.vmem [resolvable:$true] %s12_s7 }
   0x2   :  { %s1583_s8 = scalar_lea.vmem %s13_s7, 2048  ;;  %p1588_p1 = scmp.lt.s32.totalorder %s13_s7, %s13_s7 }
   0x3   :  { %p1584_p0 = scmp.ne.s32.totalorder %s13_s7, %s1583_s8  ;;  %p1589_p2 = scmp.lt.s32.totalorder %s1583_s8, %s1583_s8 }
   0x5   :  { %p1590_p3 = por %p1589_p2, %p1588_p1 }
   0x7   :  { %p1591_p4 = pnand %p1590_p3, %p1584_p0 }
   0x9   :  { %1594 = shalt.err (!%p1591_p4)
}
   0xa   :  { %s1598_s9 = smov 128   ;;  %s1599_s10 = smov 8  }
   0xb   :  { %18 = dma.hbm_to_vmem [thread:$0]  %s1798_s0, 2048, %s13_s7, [#allocation3], %s1598_s9, %s1598_s9, %s1599_s10  }
   0xc   :  { %1595 = dma.done.wait [#allocation3], 2048  }
   0xd   :  { %1596 = vsyncadd [#allocation3], 4294965248  ;;  %v38_v0 = vlaneseq  ;;  %v23_v7 = vld [vmem:[#allocation2 + $0x8] sm:$0xff]  ;;  %v25_v8 = vld [vmem:[#allocation2 + $0x18] sm:$0xff]  ;;  %vm68_vm3 = vcmask 130048   ;;  %v1600_v13 = vmov 0.0  }
   0xe   :  { %v22_v9 = vld [vmem:[#allocation2] sm:$0xff]  ;;  %1458 = vmatprep.subr.mxu0 %v23_v7  ;;  %1465 = vmatprep.subr.mxu1 %v25_v8  ;;  %v24_v11 = vld [vmem:[#allocation2 + $0x10] sm:$0xff]  ;;  %v27_v15 = vld [vmem:[#allocation2 + $0x28] sm:$0xff]  ;;  %v1601_v34 = vmov 1.0   ;;  %vm1325_vm13 = vcmask 65536   ;;  %vm1323_vm14 = vcmask 72704  }
   0xf   :  { %v1615_v1 = vshrl.u32 %v38_v0, 7  ;;  %v42_v2 = vand.u32 127, %v38_v0  ;;  %1459 = vmatpush3.msra.mxu0 %v23_v7  ;;  %1466 = vmatpush3.msra.mxu1 %v25_v8  ;;  %v29_v16 = vld [vmem:[#allocation2 + $0x38] sm:$0xff]  ;;  %v26_v18 = vld [vmem:[#allocation2 + $0x20] sm:$0xff]  ;;  %v28_v19 = vld [vmem:[#allocation2 + $0x30] sm:$0xff] }
  0x10   :  { %1460 = vmatprep.subr.mxu0 %v22_v9  ;;  %1467 = vmatprep.subr.mxu1 %v24_v11  ;;  %v31_v20 = vld [vmem:[#allocation2 + $0x48] sm:$0xff]  ;;  %v33_v21 = vld [vmem:[#allocation2 + $0x58] sm:$0xff]  ;;  %v30_v23 = vld [vmem:[#allocation2 + $0x40] sm:$0xff] }
  0x11   :  { %v43_v3 = vadd.s32 1, %v42_v2  ;;  %v44_v4 = vmul.u32 2, %v1615_v1  ;;  %v40_v5 = vadd.s32 8, %v1615_v1  ;;  %1461 = vmatpush3.msra.mxu0 %v22_v9  ;;  %1468 = vmatpush3.msra.mxu1 %v24_v11  ;;  %v58_v22 = vmul.u32 2, %v42_v2  ;;  %v32_v24 = vld [vmem:[#allocation2 + $0x50] sm:$0xff]  ;;  %v35_v27 = vld [vmem:[#allocation2 + $0x68] sm:$0xff] }
  0x12   :  { %1472 = vmatprep.subr.mxu0 %v27_v15  ;;  %1479 = vmatprep.subr.mxu1 %v29_v16  ;;  %v37_v28 = vld [vmem:[#allocation2 + $0x78] sm:$0xff]  ;;  %v56_v29 = vadd.s32 1, %v1615_v1  ;;  %v34_v30 = vld [vmem:[#allocation2 + $0x60] sm:$0xff]  ;;  %v36_v31 = vld [vmem:[#allocation2 + $0x70] sm:$0xff] }
  0x13   :  { %vm46_vm0 = vcmp.ge.s32.totalorder %v43_v3, %v44_v4  ;;  %v48_v6 = vadd.s32 2, %v44_v4  ;;  %v45_v10 = vmul.u32 2, %v40_v5  ;;  %v57_v25 = vadd.s32 1, %v40_v5 }
  0x14   :  { %v61_v26 = vadd.s32 2, %v58_v22  ;;  %vm59_vm9 = vcmp.ge.s32.totalorder %v56_v29, %v58_v22 }
  0x15   :  { %vm50_vm1 = vcmp.lt.s32.totalorder %v43_v3, %v48_v6  ;;  %vm47_vm4 = vcmp.ge.s32.totalorder %v43_v3, %v45_v10  ;;  %v49_v12 = vadd.s32 2, %v45_v10  ;;  %vm60_vm7 = vcmp.ge.s32.totalorder %v57_v25, %v58_v22 }
  0x16   :  { %vm52_vm2 = vmand %vm46_vm0, %vm50_vm1  ;;  %vm63_vm8 = vcmp.lt.s32.totalorder %v57_v25, %v61_v26  ;;  %vm62_vm10 = vcmp.lt.s32.totalorder %v56_v29, %v61_v26 }
  0x17   :  { %v1619_v14 = vsel %vm52_vm2, 1.0, %v1600_v13  ;;  %vm51_vm5 = vcmp.lt.s32.totalorder %v43_v3, %v49_v12  ;;  %vm1640_vm11 = vmand %vm60_vm7, %vm63_vm8 }
  0x18   :  { %1462 = vmatprep.mubr.msk.f32.mxu0 %vm68_vm3, %v1619_v14  ;;  %1469 = vmatprep.mubr.msk.f32.mxu1 %vm68_vm3, %v1619_v14  ;;  %vm53_vm6 = vmand %vm47_vm4, %vm51_vm5 }
  0x19   :  { %v55_v17 = vsel %vm53_vm6, 1.0, %v1600_v13  ;;  %vm1648_vm12 = vmand %vm59_vm9, %vm62_vm10 }
  0x1a   :  { %1463 = vmatmul.mubr.msk.f32.vlgmr.msra.gmra.mxu0 %vm68_vm3, %v55_v17  ;;  %1470 = vmatmul.mubr.msk.f32.vlgmr.msra.gmra.mxu1 %vm68_vm3, %v55_v17 }
  0x1b   :  { %1473 = vmatpush3.msra.mxu0 %v27_v15  ;;  %1480 = vmatpush3.msra.mxu1 %v29_v16 }
  0x1c   :  { %1474 = vmatprep.subr.mxu0 %v26_v18  ;;  %1481 = vmatprep.subr.mxu1 %v28_v19 }
  0x1d   :  { %1475 = vmatpush3.msra.mxu0 %v26_v18  ;;  %1482 = vmatpush3.msra.mxu1 %v28_v19 }
  0x1e   :  { %1476 = vmatprep.mubr.msk.f32.mxu0 %vm68_vm3, %v1619_v14  ;;  %1483 = vmatprep.mubr.msk.f32.mxu1 %vm68_vm3, %v1619_v14 }
  0x1f   :  { %1486 = vmatprep.subr.mxu0 %v31_v20  ;;  %1493 = vmatprep.subr.mxu1 %v33_v21 }
  0x20   :  { %1477 = vmatmul.mubr.msk.f32.vlgmr.msra.gmra.mxu0 %vm68_vm3, %v55_v17  ;;  %1484 = vmatmul.mubr.msk.f32.vlgmr.msra.gmra.mxu1 %vm68_vm3, %v55_v17 }
  0x21   :  { %1487 = vmatpush3.msra.mxu0 %v31_v20  ;;  %1494 = vmatpush3.msra.mxu1 %v33_v21 }
  0x22   :  { %1488 = vmatprep.subr.mxu0 %v30_v23  ;;  %1495 = vmatprep.subr.mxu1 %v32_v24 }
  0x23   :  { %1489 = vmatpush3.msra.mxu0 %v30_v23  ;;  %1496 = vmatpush3.msra.mxu1 %v32_v24 }
  0x24   :  { %1490 = vmatprep.mubr.msk.f32.mxu0 %vm68_vm3, %v1619_v14  ;;  %1497 = vmatprep.mubr.msk.f32.mxu1 %vm68_vm3, %v1619_v14 }
  0x25   :  { %1500 = vmatprep.subr.mxu0 %v35_v27  ;;  %1507 = vmatprep.subr.mxu1 %v37_v28 }
  0x26   :  { %1491 = vmatmul.mubr.msk.f32.vlgmr.msra.gmra.mxu0 %vm68_vm3, %v55_v17  ;;  %1498 = vmatmul.mubr.msk.f32.vlgmr.msra.gmra.mxu1 %vm68_vm3, %v55_v17 }
  0x27   :  { %1501 = vmatpush3.msra.mxu0 %v35_v27  ;;  %1508 = vmatpush3.msra.mxu1 %v37_v28 }
  0x28   :  { %1502 = vmatprep.subr.mxu0 %v34_v30  ;;  %1509 = vmatprep.subr.mxu1 %v36_v31 }
  0x29   :  { %1503 = vmatpush3.msra.mxu0 %v34_v30  ;;  %1510 = vmatpush3.msra.mxu1 %v36_v31 }
  0x2a   :  { %1504 = vmatprep.mubr.msk.f32.mxu0 %vm68_vm3, %v1619_v14  ;;  %1511 = vmatprep.mubr.msk.f32.mxu1 %vm68_vm3, %v1619_v14 }
  0x2b   :  { %1505 = vmatmul.mubr.msk.f32.vlgmr.msra.gmra.mxu0 %vm68_vm3, %v55_v17  ;;  %1512 = vmatmul.mubr.msk.f32.vlgmr.msra.gmra.mxu1 %vm68_vm3, %v55_v17 }
  0x2c   :  { %1514 = vmatprep.subr.msk.mxu0 %vm1640_vm11, %v1601_v34  ;;  %1521 = vmatprep.subr.msk.mxu1 %vm1640_vm11, %v1601_v34 }
  0x2d   :  { %1515 = vmatpush3.msk.msra.mxu0 %vm1640_vm11, %v1601_v34  ;;  %1522 = vmatpush3.msk.msra.mxu1 %vm1640_vm11, %v1601_v34 }
  0x2e   :  { %1516 = vmatprep.subr.msk.mxu0 %vm1648_vm12, %v1601_v34  ;;  %1523 = vmatprep.subr.msk.mxu1 %vm1648_vm12, %v1601_v34 }
  0x2f   :  { %1517 = vmatpush3.msk.msra.mxu0 %vm1648_vm12, %v1601_v34  ;;  %1524 = vmatpush3.msk.msra.mxu1 %vm1648_vm12, %v1601_v34 }
  0x30   :  { %1528 = vmatprep.subr.msk.mxu0 %vm1640_vm11, %v1601_v34  ;;  %1535 = vmatprep.subr.msk.mxu1 %vm1640_vm11, %v1601_v34 }
  0xda   :  { %v1464_v35 = vpop.f32.mrf.mxu0  ;;  %v1471_v36 = vpop.f32.mrf.mxu1 }
  0xdc   :  { %v141_v37 = vpop.f32.mrf.mxu0  ;;  %v216_v38 = vpop.f32.mrf.mxu1 }
  0xdd   :  { %1518 = vmatprep.mubr.msk.f32.mxu0 %vm68_vm3, %v141_v37  ;;  %1525 = vmatprep.mubr.msk.f32.mxu1 %vm68_vm3, %v216_v38 }
  0xde   :  { %1519 = vmatmul.mubr.msk.f32.vlgmr.msra.gmra.mxu0 %vm68_vm3, %v1464_v35  ;;  %1526 = vmatmul.mubr.msk.f32.vlgmr.msra.gmra.mxu1 %vm68_vm3, %v1471_v36 }
  0xdf   :  { %1529 = vmatpush3.msk.msra.mxu0 %vm1640_vm11, %v1601_v34  ;;  %1536 = vmatpush3.msk.msra.mxu1 %vm1640_vm11, %v1601_v34 }
  0xe0   :  { %v1478_v39 = vpop.f32.mrf.mxu0  ;;  %v1485_v40 = vpop.f32.mrf.mxu1  ;;  %1530 = vmatprep.subr.msk.mxu0 %vm1648_vm12, %v1601_v34  ;;  %1537 = vmatprep.subr.msk.mxu1 %vm1648_vm12, %v1601_v34 }
  0xe1   :  { %1531 = vmatpush3.msk.msra.mxu0 %vm1648_vm12, %v1601_v34  ;;  %1538 = vmatpush3.msk.msra.mxu1 %vm1648_vm12, %v1601_v34 }
  0xe2   :  { %v291_v41 = vpop.f32.mrf.mxu0  ;;  %v366_v42 = vpop.f32.mrf.mxu1  ;;  %1542 = vmatprep.subr.msk.mxu0 %vm1640_vm11, %v1601_v34  ;;  %1549 = vmatprep.subr.msk.mxu1 %vm1640_vm11, %v1601_v34 }
  0xe3   :  { %1532 = vmatprep.mubr.msk.f32.mxu0 %vm68_vm3, %v291_v41  ;;  %1539 = vmatprep.mubr.msk.f32.mxu1 %vm68_vm3, %v366_v42 }
  0xe4   :  { %1533 = vmatmul.mubr.msk.f32.vlgmr.msra.gmra.mxu0 %vm68_vm3, %v1478_v39  ;;  %1540 = vmatmul.mubr.msk.f32.vlgmr.msra.gmra.mxu1 %vm68_vm3, %v1485_v40 }
  0xe5   :  { %1543 = vmatpush3.msk.msra.mxu0 %vm1640_vm11, %v1601_v34  ;;  %1550 = vmatpush3.msk.msra.mxu1 %vm1640_vm11, %v1601_v34 }
  0xe6   :  { %v1492_v43 = vpop.f32.mrf.mxu0  ;;  %v1499_v44 = vpop.f32.mrf.mxu1  ;;  %1544 = vmatprep.subr.msk.mxu0 %vm1648_vm12, %v1601_v34  ;;  %1551 = vmatprep.subr.msk.mxu1 %vm1648_vm12, %v1601_v34 }
  0xe7   :  { %1545 = vmatpush3.msk.msra.mxu0 %vm1648_vm12, %v1601_v34  ;;  %1552 = vmatpush3.msk.msra.mxu1 %vm1648_vm12, %v1601_v34 }
  0xe8   :  { %v441_v45 = vpop.f32.mrf.mxu0  ;;  %v516_v46 = vpop.f32.mrf.mxu1  ;;  %1556 = vmatprep.subr.msk.mxu0 %vm1640_vm11, %v1601_v34  ;;  %1563 = vmatprep.subr.msk.mxu1 %vm1640_vm11, %v1601_v34 }
  0xe9   :  { %1546 = vmatprep.mubr.msk.f32.mxu0 %vm68_vm3, %v441_v45  ;;  %1553 = vmatprep.mubr.msk.f32.mxu1 %vm68_vm3, %v516_v46 }
  0xea   :  { %1547 = vmatmul.mubr.msk.f32.vlgmr.msra.gmra.mxu0 %vm68_vm3, %v1492_v43  ;;  %1554 = vmatmul.mubr.msk.f32.vlgmr.msra.gmra.mxu1 %vm68_vm3, %v1499_v44 }
  0xeb   :  { %v1506_v47 = vpop.f32.mrf.mxu0  ;;  %v1513_v48 = vpop.f32.mrf.mxu1  ;;  %1557 = vmatpush3.msk.msra.mxu0 %vm1640_vm11, %v1601_v34  ;;  %1564 = vmatpush3.msk.msra.mxu1 %vm1640_vm11, %v1601_v34 }
  0xec   :  { %1558 = vmatprep.subr.msk.mxu0 %vm1648_vm12, %v1601_v34  ;;  %1565 = vmatprep.subr.msk.mxu1 %vm1648_vm12, %v1601_v34 }
  0xed   :  { %v591_v49 = vpop.f32.mrf.mxu0  ;;  %v666_v50 = vpop.f32.mrf.mxu1  ;;  %1559 = vmatpush3.msk.msra.mxu0 %vm1648_vm12, %v1601_v34  ;;  %1566 = vmatpush3.msk.msra.mxu1 %vm1648_vm12, %v1601_v34 }
  0xee   :  { %1560 = vmatprep.mubr.msk.f32.mxu0 %vm68_vm3, %v591_v49  ;;  %1567 = vmatprep.mubr.msk.f32.mxu1 %vm68_vm3, %v666_v50 }
  0xef   :  { %1561 = vmatmul.mubr.msk.f32.vlgmr.msra.gmra.mxu0 %vm68_vm3, %v1506_v47  ;;  %1568 = vmatmul.mubr.msk.f32.vlgmr.msra.gmra.mxu1 %vm68_vm3, %v1513_v48 }
 0x19e   :  { %v1520_v51 = vpop.f32.mrf.mxu0  ;;  %v1527_v52 = vpop.f32.mrf.mxu1 }
 0x19f   :  { %1326 = vst.msk [vmem:[%s1799_s1 + $0x8] sm:$0x1] %vm1325_vm13, %v1520_v51  ;;  %1328 = vst.msk [vmem:[%s1799_s1 + $0x18] sm:$0x1] %vm1325_vm13, %v1527_v52 }
 0x1a0   :  { %v747_v53 = vpop.f32.mrf.mxu0  ;;  %v828_v54 = vpop.f32.mrf.mxu1 }
 0x1a1   :  { %1324 = vst.msk [vmem:[%s1799_s1] sm:$0xff] %vm1323_vm14, %v747_v53  ;;  %1327 = vst.msk [vmem:[%s1799_s1 + $0x10] sm:$0xff] %vm1323_vm14, %v828_v54 }
 0x1a4   :  { %v1534_v55 = vpop.f32.mrf.mxu0  ;;  %v1541_v56 = vpop.f32.mrf.mxu1 }
 0x1a5   :  { %1330 = vst.msk [vmem:[%s1799_s1 + $0x28] sm:$0x1] %vm1325_vm13, %v1534_v55  ;;  %1332 = vst.msk [vmem:[%s1799_s1 + $0x38] sm:$0x1] %vm1325_vm13, %v1541_v56 }
 0x1a6   :  { %v909_v57 = vpop.f32.mrf.mxu0  ;;  %v990_v58 = vpop.f32.mrf.mxu1 }
 0x1a7   :  { %1329 = vst.msk [vmem:[%s1799_s1 + $0x20] sm:$0xff] %vm1323_vm14, %v909_v57  ;;  %1331 = vst.msk [vmem:[%s1799_s1 + $0x30] sm:$0xff] %vm1323_vm14, %v990_v58 }
 0x1aa   :  { %v1548_v59 = vpop.f32.mrf.mxu0  ;;  %v1555_v60 = vpop.f32.mrf.mxu1 }
 0x1ab   :  { %1334 = vst.msk [vmem:[%s1799_s1 + $0x48] sm:$0x1] %vm1325_vm13, %v1548_v59  ;;  %1336 = vst.msk [vmem:[%s1799_s1 + $0x58] sm:$0x1] %vm1325_vm13, %v1555_v60 }
 0x1ac   :  { %v1071_v61 = vpop.f32.mrf.mxu0  ;;  %v1152_v62 = vpop.f32.mrf.mxu1 }
 0x1ad   :  { %1333 = vst.msk [vmem:[%s1799_s1 + $0x40] sm:$0xff] %vm1323_vm14, %v1071_v61  ;;  %1335 = vst.msk [vmem:[%s1799_s1 + $0x50] sm:$0xff] %vm1323_vm14, %v1152_v62 }
 0x1af   :  { %v1562_v63 = vpop.f32.mrf.mxu0  ;;  %v1569_v0 = vpop.f32.mrf.mxu1 }
 0x1b0   :  { %1338 = vst.msk [vmem:[%s1799_s1 + $0x68] sm:$0x1] %vm1325_vm13, %v1562_v63  ;;  %1340 = vst.msk [vmem:[%s1799_s1 + $0x78] sm:$0x1] %vm1325_vm13, %v1569_v0 }
 0x1b1   :  { %v1233_v1 = vpop.f32.mrf.mxu0  ;;  %v1314_v2 = vpop.f32.mrf.mxu1 }
 0x1b2   :  { %1337 = vst.msk [vmem:[%s1799_s1 + $0x60] sm:$0xff] %vm1323_vm14, %v1233_v1  ;;  %1339 = vst.msk [vmem:[%s1799_s1 + $0x70] sm:$0xff] %vm1323_vm14, %v1314_v2 }
 0x1b3   :  { %1345 = vsyncpa [#allocation3], 1 }

</bundles_post_ra>
